<compile_context>
chip_gen: v6e
topology: v6e:2x2x1
jax: 0.10.0
libtpu: 0.0.40
codegen_flags: <defaults>
</compile_context>

<pallas_src>
import jax
import jax.numpy as jnp
from jax.experimental import pallas as pl
from jax.experimental.pallas import tpu as pltpu


def _round_up(n, m):
    return -(-n // m) * m


def _divisors(n):
    ds = set()
    d = 1
    while d * d <= n:
        if n % d == 0:
            ds.add(d)
            ds.add(n // d)
        d += 1
    return sorted(ds)


def _choose_tiles(B, C, hidden, M, itemsize=4):
    """Pick (pixel_tile tm, batch_block bb, needs_pad, M_pad)."""
    c_pad = max(8, _round_up(C, 8))            # channels pad to sublanes in VMEM
    h_pad = _round_up(hidden, 8)
    # Per (image, pixel-column) VMEM bytes: double-buffered input + double-
    # buffered output + one f32 dot temp.
    col_bytes = (2 * c_pad + 3 * h_pad) * itemsize
    vmem_budget = 24 << 20                     # headroom under 32 MiB scoped VMEM (v7x)
    target_step_bytes = 4 << 20                # aim for >= 4 MiB HBM traffic / step

    cap_tm = min(32 * 1024, max(128, (vmem_budget // col_bytes) // 128 * 128))

    needs_pad = False
    if M <= cap_tm:
        tm = M                                 # whole pixel axis in one block (always legal)
    elif M % 128 == 0:
        # Largest divisor of M that is a multiple of 128 and <= cap_tm -> no padding.
        best = 1
        for d in _divisors(M // 128):
            if d * 128 <= cap_tm and d > best:
                best = d
        tm = best * 128
    else:
        # Rare: ragged pixel count larger than the tile cap. Padded fallback
        # (costs one extra HBM round trip for the pad + output slice).
        needs_pad = True
        tm = cap_tm
    M_pad = _round_up(M, tm) if needs_pad else M

    # Batch blocking: only matters when tm (== M) is small.  Take the smallest
    # divisor of B that reaches the traffic target while fitting VMEM (keeps
    # grid steps for 2-TC sharding on v7x when possible).
    bb = 1
    for d in _divisors(B):
        if d > 32 or d * tm * col_bytes > vmem_budget:
            break
        bb = d
        if d * tm * h_pad * itemsize >= target_step_bytes:
            break
    return tm, bb, needs_pad, M_pad


def _conv1x1_relu_kernel(x_ref, w_ref, b_ref, o_ref):
    # x_ref: (bb, C, tm)   w_ref: (hidden, C)   b_ref: (hidden, 1)
    # o_ref: (bb, hidden, tm)
    w = w_ref[...]
    b = b_ref[...]
    # bb is small and static -> unrolled per-image MXU matmuls, lane-dense stores.
    for n in range(o_ref.shape[0]):
        y = jnp.dot(w, x_ref[n], preferred_element_type=jnp.float32)  # (hidden, tm)
        o_ref[n] = jnp.maximum(y + b, 0.0).astype(o_ref.dtype)


def early_embed(x, weight, bias, *, out_dtype=None):
    """x: (B, C_in, H, W) float32 (NCHW, like PyTorch).
    weight: (hidden, C_in)   bias: (hidden,)
    Returns ReLU(conv1x1(x)): (B, hidden, H, W)."""
    B, C, H, W = x.shape
    hidden = weight.shape[0]
    M = H * W
    out_dtype = x.dtype if out_dtype is None else out_dtype

    tm, bb, needs_pad, M_pad = _choose_tiles(B, C, hidden, M)

    x_flat = x.reshape(B, C, M)                      # free NCHW view
    if needs_pad:
        x_flat = jnp.pad(x_flat, ((0, 0), (0, 0), (0, M_pad - M)))

    b2 = bias.reshape(hidden, 1)                     # broadcasts over the lane axis

    cost = pl.CostEstimate(
        flops=2 * B * M * C * hidden,
        transcendentals=0,
        bytes_accessed=(B * M * C + B * M * hidden + hidden * C + hidden) * 4,
    )

    out_flat = pl.pallas_call(
        _conv1x1_relu_kernel,
        out_shape=jax.ShapeDtypeStruct((B, hidden, M_pad), out_dtype),
        grid_spec=pltpu.PrefetchScalarGridSpec(
            num_scalar_prefetch=0,
            grid=(B // bb, M_pad // tm),
            in_specs=[
                pl.BlockSpec((bb, C, tm), lambda b, i: (b, 0, i)),   # pixel tile(s)
                pl.BlockSpec((hidden, C), lambda b, i: (0, 0)),      # full weight
                pl.BlockSpec((hidden, 1), lambda b, i: (0, 0)),      # full bias
            ],
            out_specs=pl.BlockSpec((bb, hidden, tm), lambda b, i: (b, 0, i)),
        ),
        compiler_params=pltpu.CompilerParams(
            dimension_semantics=("parallel", "parallel"),
            # Raise v5e's 16 MiB scoped default; matches v6e/v7x defaults and
            # stays below every generation's physical VMEM.
            vmem_limit_bytes=32 * 1024 * 1024,
        ),
        cost_estimate=cost,
    )(x_flat, weight, b2)

    if needs_pad:
        out_flat = out_flat[:, :, :M]
    return out_flat.reshape(B, hidden, H, W)


if __name__ == "__main__":
    hidden_size = 32
    B, C, H, W = 2, 3, 16, 16

    key = jax.random.PRNGKey(0)
    kx, kw, kb = jax.random.split(key, 3)

    x = jax.random.normal(kx, (B, C, H, W), dtype=jnp.float32)
    # Deterministic synthetic parameters matching Conv2d(3, hidden, k=1) shapes.
    weight = jax.random.normal(kw, (hidden_size, C), dtype=jnp.float32) * 0.1
    bias = jax.random.normal(kb, (hidden_size,), dtype=jnp.float32) * 0.1

    out = jax.block_until_ready(early_embed(x, weight, bias))

    # Pure-JAX reference: 1x1 conv == channel matmul, then ReLU.
    ref = jnp.maximum(
        jnp.einsum("bchw,oc->bohw", x, weight) + bias[None, :, None, None], 0.0)

    assert out.shape == (B, hidden_size, H, W)
    assert jnp.allclose(out, ref, atol=1e-5, rtol=1e-5)
    print("KERNEL_OK")
</pallas_src>

<mosaic_0001>
module attributes {stable_mosaic.version = 11 : i64} {
  func.func @_conv1x1_relu_kernel(%arg0: i32, %arg1: i32, %arg2: memref<2x3x256xf32, #tpu.memory_space<vmem>>, %arg3: memref<32x3xf32, #tpu.memory_space<vmem>>, %arg4: memref<32x1xf32, #tpu.memory_space<vmem>>, %arg5: memref<2x32x256xf32, #tpu.memory_space<vmem>>) attributes {dimension_semantics = [#tpu.dimension_semantics<parallel>, #tpu.dimension_semantics<parallel>], iteration_bounds = array<i64: 1, 1>, scalar_prefetch = 0 : i64, scratch_operands = 0 : i64, tpu.core_type = #tpu.core_type<tc>, window_params = [{transform_indices = @transform_0, window_bounds = array<i64: 2, 3, 256>}, {pipeline_mode = #tpu.pipeline_mode<synchronous>, transform_indices = @transform_1, window_bounds = array<i64: 32, 3>}, {pipeline_mode = #tpu.pipeline_mode<synchronous>, transform_indices = @transform_2, window_bounds = array<i64: 32, 1>}, {transform_indices = @transform_3, window_bounds = array<i64: 2, 32, 256>}]} {
    %c0 = arith.constant 0 : index
    %c0_0 = arith.constant 0 : index
    %0 = vector.load %arg3[%c0, %c0_0] : memref<32x3xf32, #tpu.memory_space<vmem>>, vector<32x3xf32>
    %c0_1 = arith.constant 0 : index
    %c0_2 = arith.constant 0 : index
    %1 = vector.load %arg4[%c0_1, %c0_2] : memref<32x1xf32, #tpu.memory_space<vmem>>, vector<32x1xf32>
    %c0_3 = arith.constant 0 : index
    %c0_4 = arith.constant 0 : index
    %c0_5 = arith.constant 0 : index
    %2 = vector.load %arg2[%c0_3, %c0_4, %c0_5] : memref<2x3x256xf32, #tpu.memory_space<vmem>>, vector<1x3x256xf32>
    %3 = vector.shape_cast %2 : vector<1x3x256xf32> to vector<3x256xf32>
    %cst = arith.constant dense<0.000000e+00> : vector<32x256xf32>
    %4 = tpu.matmul %0, %3, %cst {dimension_numbers = #tpu.dot_dimension_numbers<[1], [0], [0], [1], [0, 0, 1, 1], [], []>} : vector<32x3xf32>, vector<3x256xf32>, vector<32x256xf32> -> vector<32x256xf32>
    %5 = vector.broadcast %1 : vector<32x1xf32> to vector<32x256xf32>
    %6 = arith.addf %4, %5 : vector<32x256xf32>
    %cst_6 = arith.constant 0.000000e+00 : f32
    %7 = vector.broadcast %cst_6 : f32 to vector<32x256xf32>
    %8 = arith.maximumf %6, %7 : vector<32x256xf32>
    %c0_7 = arith.constant 0 : index
    %c0_8 = arith.constant 0 : index
    %c0_9 = arith.constant 0 : index
    %9 = vector.load %arg5[%c0_7, %c0_8, %c0_9] : memref<2x32x256xf32, #tpu.memory_space<vmem>>, vector<1x32x256xf32>
    %10 = vector.shape_cast %9 : vector<1x32x256xf32> to vector<32x256xf32>
    %11 = vector.shape_cast %8 : vector<32x256xf32> to vector<1x32x256xf32>
    tpu.vector_store %arg5[%c0_7, %c0_8, %c0_9], %11 {strides = array<i32>} : memref<2x32x256xf32, #tpu.memory_space<vmem>>, vector<1x32x256xf32>,
    %c1 = arith.constant 1 : index
    %c0_10 = arith.constant 0 : index
    %c0_11 = arith.constant 0 : index
    %12 = vector.load %arg2[%c1, %c0_10, %c0_11] : memref<2x3x256xf32, #tpu.memory_space<vmem>>, vector<1x3x256xf32>
    %13 = vector.shape_cast %12 : vector<1x3x256xf32> to vector<3x256xf32>
    %cst_12 = arith.constant dense<0.000000e+00> : vector<32x256xf32>
    %14 = tpu.matmul %0, %13, %cst_12 {dimension_numbers = #tpu.dot_dimension_numbers<[1], [0], [0], [1], [0, 0, 1, 1], [], []>} : vector<32x3xf32>, vector<3x256xf32>, vector<32x256xf32> -> vector<32x256xf32>
    %15 = vector.broadcast %1 : vector<32x1xf32> to vector<32x256xf32>
    %16 = arith.addf %14, %15 : vector<32x256xf32>
    %cst_13 = arith.constant 0.000000e+00 : f32
    %17 = vector.broadcast %cst_13 : f32 to vector<32x256xf32>
    %18 = arith.maximumf %16, %17 : vector<32x256xf32>
    %c1_14 = arith.constant 1 : index
    %c0_15 = arith.constant 0 : index
    %c0_16 = arith.constant 0 : index
    %19 = vector.load %arg5[%c1_14, %c0_15, %c0_16] : memref<2x32x256xf32, #tpu.memory_space<vmem>>, vector<1x32x256xf32>
    %20 = vector.shape_cast %19 : vector<1x32x256xf32> to vector<32x256xf32>
    %21 = vector.shape_cast %18 : vector<32x256xf32> to vector<1x32x256xf32>
    tpu.vector_store %arg5[%c1_14, %c0_15, %c0_16], %21 {strides = array<i32>} : memref<2x32x256xf32, #tpu.memory_space<vmem>>, vector<1x32x256xf32>,
    return
  }
  func.func @transform_0(%arg0: i32, %arg1: i32) -> (i32, i32, i32) {
    %c0_i32 = arith.constant 0 : i32
    %c0_i32_0 = arith.constant 0 : i32
    return %arg0, %c0_i32, %arg1 : i32, i32, i32
  }
  func.func @transform_1(%arg0: i32, %arg1: i32) -> (i32, i32) {
    %c0_i32 = arith.constant 0 : i32
    %c0_i32_0 = arith.constant 0 : i32
    %c0_i32_1 = arith.constant 0 : i32
    return %c0_i32, %c0_i32_0 : i32, i32
  }
  func.func @transform_2(%arg0: i32, %arg1: i32) -> (i32, i32) {
    %c0_i32 = arith.constant 0 : i32
    %c0_i32_0 = arith.constant 0 : i32
    %c0_i32_1 = arith.constant 0 : i32
    return %c0_i32, %c0_i32_0 : i32, i32
  }
  func.func @transform_3(%arg0: i32, %arg1: i32) -> (i32, i32, i32) {
    %c0_i32 = arith.constant 0 : i32
    %c0_i32_0 = arith.constant 0 : i32
    return %arg0, %c0_i32, %arg1 : i32, i32, i32
  }
}

</mosaic_0001>

<bundles_post_ra>
// kernel: tpu_custom_call.1
= control target key start
LH: loop header
LB: loop body
LE: loop exit
PB: predicated region body
PF: predicated region fallthrough
CT: control target
= control target key end

     0   :  { %vm59_vm0 = vcmask 1042432   ;;  %v343_v4 = vmov 0.0   ;;  %vm46_vm1 = vcmask 23552   ;;  %v344_v6 = vmov 0   ;;  %s413_s0 = inlined_call_operand.vmem [shape: f32[2,3,256], index: 0, kind: input, shape index: {}]   ;;  %s414_s1 = inlined_call_operand.vmem [shape: f32[32,3], index: 1, kind: input, shape index: {}]   ;;  %s415_s2 = inlined_call_operand.vmem [shape: f32[32,1], index: 2, kind: input, shape index: {}]   ;;  %s416_s3 = inlined_call_operand.hbm [shape: f32[2,32,256], index: 3, kind: output, shape index: {}]  }
   0x1   :  { %v23_v0 = vld [vmem:[%s413_s0] sm:$0x77]  ;;  %v305_v1 = vld [vmem:[%s413_s0 + $0x8] sm:$0x77]  ;;  %128 = vmatprep.mubr.f32.mxu0 %v343_v4  ;;  %241 = vmatprep.mubr.f32.mxu1 %v343_v4 }
   0x2   :  { %v45_v2 = vcombine.high %v23_v0, %v23_v0  ;;  %v172_v3 = vcombine.high %v305_v1, %v305_v1  ;;  %v15_v5 = vld [vmem:[%s414_s1] sm:$0xff]  ;;  %317 = vset.pattern.permute.xlu0 %v344_v6  ;;  %318 = vset.pattern.permute.xlu1 %v344_v6 }
   0x4   :  { %299 = vmatprep.subr.msk.mxu0 %vm59_vm0, %v45_v2  ;;  %306 = vmatprep.subr.msk.mxu1 %vm59_vm0, %v172_v3 }
   0x5   :  { %8 = vsyncpa [#allocation3], 0  ;;  %300 = vmatpush1.msk.msra.mxu0 %vm59_vm0, %v23_v0  ;;  %307 = vmatpush1.msk.msra.mxu1 %vm59_vm0, %v305_v1  ;;  %v19_v7 = vld [vmem:[%s415_s2] sm:$0xff]  ;;  %v21_v8 = vld [vmem:[%s415_s2 + $0x10] sm:$0xff] }
   0x6   :  { %301 = vmatmul.mubr.msk.f32.vlgmr.msra.gmra.mxu0 %vm46_vm1, %v15_v5  ;;  %308 = vmatmul.mubr.msk.f32.vlgmr.msra.gmra.mxu1 %vm46_vm1, %v15_v5  ;;  %v16_v9 = vld [vmem:[%s414_s1 + $0x8] sm:$0xff]  ;;  %v22_v11 = vld [vmem:[%s415_s2 + $0x18] sm:$0xff]  ;;  %v17_v12 = vld [vmem:[%s414_s1 + $0x10] sm:$0xff] }
   0x7   :  { %134 = vmatprep.mubr.f32.mxu0 %v343_v4  ;;  %247 = vmatprep.mubr.f32.mxu1 %v343_v4  ;;  %v20_v10 = vld [vmem:[%s415_s2 + $0x8] sm:$0xff]  ;;  %v18_v13 = vld [vmem:[%s414_s1 + $0x18] sm:$0xff]  ;;  %s345_s1 = smov [#allocation2]  }
   0x8   :  { %26 = vperm.xlu0 %317, %v19_v7   ;;  %36 = vperm.xlu1 %318, %v21_v8   ;;  %s288_s30 = sshll.u32 %s345_s1, 4  ;;  %s289_s30 = int_to_ptr.vmem [resolvable:$true] %s288_s30 }
   0x9   :  { %s321_s4 = scalar_lea.vmem %s289_s30, 2048  ;;  %p326_p1 = scmp.lt.s32.totalorder %s289_s30, %s289_s30 }
   0xa   :  { %302 = vmatmul.mubr.msk.f32.gmra.mxu0 %vm46_vm1, %v16_v9  ;;  %309 = vmatmul.mubr.msk.f32.gmra.mxu1 %vm46_vm1, %v16_v9  ;;  %p322_p0 = scmp.ne.s32.totalorder %s289_s30, %s321_s4  ;;  %p327_p2 = scmp.lt.s32.totalorder %s321_s4, %s321_s4 }
   0xb   :  { %140 = vmatprep.mubr.f32.mxu0 %v343_v4  ;;  %253 = vmatprep.mubr.f32.mxu1 %v343_v4 }
   0xc   :  { %31 = vperm.xlu0 %317, %v20_v10   ;;  %41 = vperm.xlu1 %318, %v22_v11   ;;  %p328_p3 = por %p327_p2, %p326_p1 }
   0xe   :  { %303 = vmatmul.mubr.msk.f32.gmra.mxu0 %vm46_vm1, %v17_v12  ;;  %310 = vmatmul.mubr.msk.f32.gmra.mxu1 %vm46_vm1, %v17_v12  ;;  %p329_p4 = pnand %p328_p3, %p322_p0 }
   0xf   :  { %146 = vmatprep.mubr.f32.mxu0 %v343_v4  ;;  %259 = vmatprep.mubr.f32.mxu1 %v343_v4 }
  0x12   :  { %304 = vmatmul.mubr.msk.f32.gmra.mxu0 %vm46_vm1, %v18_v13  ;;  %311 = vmatmul.mubr.msk.f32.gmra.mxu1 %vm46_vm1, %v18_v13 }
  0x83   :  { %v27_v14 = vpop.permute.xlu0 %26  ;;  %v37_v32 = vpop.permute.xlu1 %36 }
  0x87   :  { %v32_v19 = vpop.permute.xlu0 %31  ;;  %v42_v49 = vpop.permute.xlu1 %41 }
  0xc6   :  { %v130_v15 = vpop.f32.mrf.mxu0  ;;  %v243_v16 = vpop.f32.mrf.mxu1 }
  0xc7   :  { %v131_v17 = vadd.f32 %v130_v15, %v27_v14  ;;  %v244_v18 = vadd.f32 %v243_v16, %v27_v14 }
  0xc8   :  { %v132_v20 = vpop.f32.mrf.mxu0  ;;  %v245_v21 = vpop.f32.mrf.mxu1 }
  0xc9   :  { %v153_v22 = vmax.f32 %v131_v17, 0.0  ;;  %v266_v23 = vmax.f32 %v244_v18, 0.0  ;;  %v133_v24 = vadd.f32 %v132_v20, %v27_v14  ;;  %v246_v25 = vadd.f32 %v245_v21, %v27_v14 }
  0xca   :  { %v136_v26 = vpop.f32.mrf.mxu0  ;;  %v249_v27 = vpop.f32.mrf.mxu1 }
  0xcb   :  { %161 = vst [vmem:[#allocation2] sm:$0xff] %v153_v22  ;;  %275 = vst [vmem:[#allocation2 + $0x40] sm:$0xff] %v266_v23  ;;  %v154_v28 = vmax.f32 %v133_v24, 0.0  ;;  %v267_v29 = vmax.f32 %v246_v25, 0.0  ;;  %v137_v30 = vadd.f32 %v136_v26, %v32_v19  ;;  %v250_v31 = vadd.f32 %v249_v27, %v32_v19 }
  0xcc   :  { %v138_v33 = vpop.f32.mrf.mxu0  ;;  %v251_v34 = vpop.f32.mrf.mxu1 }
  0xcd   :  { %162 = vst [vmem:[#allocation2 + $0x8] sm:$0xff] %v154_v28  ;;  %276 = vst [vmem:[#allocation2 + $0x48] sm:$0xff] %v267_v29  ;;  %v155_v35 = vmax.f32 %v137_v30, 0.0  ;;  %v268_v36 = vmax.f32 %v250_v31, 0.0  ;;  %v139_v37 = vadd.f32 %v138_v33, %v32_v19  ;;  %v252_v38 = vadd.f32 %v251_v34, %v32_v19 }
  0xce   :  { %v142_v39 = vpop.f32.mrf.mxu0  ;;  %v255_v40 = vpop.f32.mrf.mxu1 }
  0xcf   :  { %163 = vst [vmem:[#allocation2 + $0x10] sm:$0xff] %v155_v35  ;;  %277 = vst [vmem:[#allocation2 + $0x50] sm:$0xff] %v268_v36  ;;  %v156_v41 = vmax.f32 %v139_v37, 0.0  ;;  %v269_v42 = vmax.f32 %v252_v38, 0.0  ;;  %v143_v43 = vadd.f32 %v142_v39, %v37_v32  ;;  %v256_v44 = vadd.f32 %v255_v40, %v37_v32 }
  0xd0   :  { %v144_v45 = vpop.f32.mrf.mxu0  ;;  %v257_v46 = vpop.f32.mrf.mxu1 }
  0xd1   :  { %164 = vst [vmem:[#allocation2 + $0x18] sm:$0xff] %v156_v41  ;;  %278 = vst [vmem:[#allocation2 + $0x58] sm:$0xff] %v269_v42  ;;  %v157_v47 = vmax.f32 %v143_v43, 0.0  ;;  %v270_v48 = vmax.f32 %v256_v44, 0.0  ;;  %v145_v50 = vadd.f32 %v144_v45, %v37_v32  ;;  %v258_v51 = vadd.f32 %v257_v46, %v37_v32 }
  0xd2   :  { %v148_v52 = vpop.f32.mrf.mxu0  ;;  %v261_v53 = vpop.f32.mrf.mxu1 }
  0xd3   :  { %165 = vst [vmem:[#allocation2 + $0x20] sm:$0xff] %v157_v47  ;;  %279 = vst [vmem:[#allocation2 + $0x60] sm:$0xff] %v270_v48  ;;  %v158_v54 = vmax.f32 %v145_v50, 0.0  ;;  %v271_v55 = vmax.f32 %v258_v51, 0.0  ;;  %v149_v56 = vadd.f32 %v148_v52, %v42_v49  ;;  %v262_v57 = vadd.f32 %v261_v53, %v42_v49 }
  0xd4   :  { %v150_v58 = vpop.f32.mrf.mxu0  ;;  %v263_v59 = vpop.f32.mrf.mxu1 }
  0xd5   :  { %166 = vst [vmem:[#allocation2 + $0x28] sm:$0xff] %v158_v54  ;;  %280 = vst [vmem:[#allocation2 + $0x68] sm:$0xff] %v271_v55  ;;  %v159_v60 = vmax.f32 %v149_v56, 0.0  ;;  %v272_v61 = vmax.f32 %v262_v57, 0.0  ;;  %v151_v62 = vadd.f32 %v150_v58, %v42_v49  ;;  %v264_v63 = vadd.f32 %v263_v59, %v42_v49 }
  0xd7   :  { %167 = vst [vmem:[#allocation2 + $0x30] sm:$0xff] %v159_v60  ;;  %281 = vst [vmem:[#allocation2 + $0x70] sm:$0xff] %v272_v61  ;;  %v160_v0 = vmax.f32 %v151_v62, 0.0  ;;  %v273_v1 = vmax.f32 %v264_v63, 0.0 }
  0xd9   :  { %168 = vst [vmem:[#allocation2 + $0x38] sm:$0xff] %v160_v0  ;;  %282 = vst [vmem:[#allocation2 + $0x78] sm:$0xff] %v273_v1 }
  0xda   :  { %332 = shalt.err (!%p329_p4)
}
  0xdb   :  { %s346_s5 = smov 256   ;;  %s347_s6 = smov 16  }
  0xdc   :  { %294 = dma.vmem_to_hbm [thread:$0]  %s289_s30, 2048, %s416_s3, [#allocation3], %s346_s5, %s346_s5, %s347_s6  }
  0xdd   :  { %341 = dma.done.wait [#allocation3], 2048  }
  0xde   :  { %342 = vsyncadd [#allocation3], 4294965248 }
  0xdf   :  { %298 = vsyncpa [#allocation3], 1 }

</bundles_post_ra>
